<compile_context>
chip_gen: v5e
topology: v5e:2x2
jax: 0.10.0
libtpu: 0.0.40
codegen_flags: <defaults>
</compile_context>

<pallas_src>
import functools

import jax
import jax.numpy as jnp
from jax import lax
from jax.experimental import pallas as pl
from jax.experimental.pallas import tpu as pltpu

_LANE = 128
_H1, _H2, _O = 50, 20, 1


def _cdiv(a, b):
    return -(-a // b)


def _round_up(x, m):
    return ((x + m - 1) // m) * m


def _round_down(x, m):
    return (x // m) * m


# --------------------------------------------------------------------------- #
# Kernel
# --------------------------------------------------------------------------- #
def _disc_kernel(x_ref, w1_ref, b1_ref, w2_ref, b2_ref, w3_ref, b3_ref,
                 o_ref, acc_ref, *, f_total, tk, mask_k):
    """Grid = (batch_tiles, feature_tiles); feature axis is the reduction."""
    k = pl.program_id(1)

    @pl.when(k == 0)
    def _init():
        acc_ref[...] = jnp.zeros_like(acc_ref)

    x = x_ref[...]
    w1 = w1_ref[...]
    if mask_k:
        # F is not a multiple of tk: the last K block reads stale VMEM beyond
        # column F.  Zero both operands' invalid region so garbage (even
        # NaN/Inf) cannot contaminate the accumulator.
        valid = f_total - k * tk
        col = lax.broadcasted_iota(jnp.int32, x.shape, 1)
        x = jnp.where(col < valid, x, 0).astype(x.dtype)
        row = lax.broadcasted_iota(jnp.int32, w1.shape, 0)
        w1 = jnp.where(row < valid, w1, 0).astype(w1.dtype)

    # Layer 1 partial product on the MXU, f32 accumulation in VMEM scratch.
    acc_ref[...] += jnp.dot(x, w1, preferred_element_type=jnp.float32)

    @pl.when(k == pl.num_programs(1) - 1)
    def _finalize():
        h1 = jnp.maximum(acc_ref[...] + b1_ref[...], 0.0)            # (bt, 50)
        h2 = jnp.dot(h1.astype(w2_ref.dtype), w2_ref[...],
                     preferred_element_type=jnp.float32) + b2_ref[...]
        h2 = jnp.maximum(h2, 0.0)                                     # (bt, 20)
        # Layer 3 has one output feature: VPU multiply + lane reduce instead of
        # a degenerate N=1 MXU matmul.  Output stays a (bt, 1) column (tiny
        # masked store; cheaper than a per-tile sublane->lane transpose).
        w3 = w3_ref[...].astype(jnp.float32)                          # (1, 20)
        out = jnp.sum(h2 * w3, axis=-1, keepdims=True) + b3_ref[...]  # (bt, 1)
        o_ref[...] = out.astype(o_ref.dtype)


# --------------------------------------------------------------------------- #
# Tiling / VMEM budgeting
# --------------------------------------------------------------------------- #
def _vmem_config():
    """(vmem_limit_bytes, per-buffer x byte target) by TPU generation."""
    cap = 64 << 20
    try:
        info = pltpu.get_tpu_info()
        cap = int(getattr(info, "vmem_capacity_bytes", cap) or cap)
    except Exception:
        pass
    if cap >= (128 << 20):          # v5e / v6e: 128 MiB VMEM per core
        return 100 << 20, 16 << 20
    return 48 << 20, 8 << 20        # v7x: 64 MiB VMEM per TensorCore


def _choose_tiles(B, F, compute_itemsize, out_itemsize,
                  batch_tile, feature_tile, vmem_limit, x_buf_target):
    # ---- feature (K) tile: whole F when it fits, else 128-aligned slices ----
    if feature_tile is not None:
        tk = F if feature_tile >= F else max(_LANE, _round_down(feature_tile, _LANE))
    else:
        max_tk = max(_LANE, _round_down((8 << 20) // (_LANE * compute_itemsize), _LANE))
        tk = F if F <= max_tk else max_tk
    nk = _cdiv(F, tk)
    tk_lanes = _round_up(tk, _LANE)           # lane-padded width as stored in VMEM

    # ---- batch-independent resident VMEM (w1 slice + small constants/slop) ----
    w1_bufs = 1 if nk == 1 else 2             # w1 only streams (double-buffers) over K
    resident = w1_bufs * _round_up(tk, 32) * _LANE * compute_itemsize + (1 << 20)

    # ---- per-batch-row VMEM: x (2 buffers), f32 accumulator, (bt,1) output ----
    per_row = (2 * tk_lanes * compute_itemsize   # x tile, double-buffered
               + _LANE * 4                       # accumulator (50 -> 128 lanes, f32)
               + 2 * _LANE * out_itemsize)       # (bt, 1) output block, lane-padded
    usable = max(vmem_limit - (8 << 20) - resident, per_row)

    bt_req = batch_tile if batch_tile is not None else max(
        x_buf_target // (tk_lanes * compute_itemsize), 1)
    bt = min(bt_req, usable // per_row)

    if B >= 2 * _LANE:
        bt = min(bt, _round_up(_cdiv(B, 2), _LANE))   # keep >= 2 grid steps (megacore)
        bt = max(_LANE, _round_down(bt, _LANE))       # lane-aligned tiles
    elif B > _LANE:
        bt = _LANE                                     # 2 steps: 128 + partial
    else:
        bt = B                                         # single full-extent block
    return bt, tk, _cdiv(B, bt), nk


# --------------------------------------------------------------------------- #
# Wrapper
# --------------------------------------------------------------------------- #
def discriminator_forward(x, params, *, compute_dtype=jnp.bfloat16,
                          batch_tile=None, feature_tile=None,
                          single_buffer_weights=True):
    """Forward pass. x: (B, num_ftrs). Returns (B, 1) in x's original dtype.

    compute_dtype=bfloat16 (default) halves the HBM x/weight stream with f32
    accumulation; compute_dtype=None keeps exact f32 forward semantics.
    """
    out_dtype = x.dtype
    w1, b1, w2, b2, w3, b3 = (params[k] for k in ("w1", "b1", "w2", "b2", "w3", "b3"))
    if compute_dtype is not None:
        x = x.astype(compute_dtype)
        w1 = w1.astype(compute_dtype)
        w2 = w2.astype(compute_dtype)
        w3 = w3.astype(compute_dtype)

    B, F = x.shape
    H1, H2 = w1.shape[1], w2.shape[1]
    w3_row = w3.reshape(1, H2)

    c_item = jnp.dtype(x.dtype).itemsize
    o_item = jnp.dtype(out_dtype).itemsize
    vmem_limit, x_buf_target = _vmem_config()
    bt, tk, nb, nk = _choose_tiles(B, F, c_item, o_item,
                                   batch_tile, feature_tile, vmem_limit, x_buf_target)

    flops = 2 * B * (F * H1 + H1 * H2 + H2 * _O)
    bytes_accessed = (B * F * c_item
                      + (F * H1 + H1 * H2 + H2 * _O) * c_item
                      + (H1 + H2 + _O) * 4
                      + B * o_item)
    cost = pl.CostEstimate(flops=int(flops), transcendentals=0,
                           bytes_accessed=int(bytes_accessed))

    kernel = functools.partial(_disc_kernel, f_total=F, tk=tk, mask_k=(F % tk != 0))

    def _spec(shape, index_map, mode):
        if mode is None:
            return pl.BlockSpec(shape, index_map)
        return pl.BlockSpec(shape, index_map, pipeline_mode=mode)

    def _build(single_buffer):
        # Constant-index blocks don't need a second pipeline buffer; w1 only
        # when it is fully resident (nk == 1).
        const_mode = pl.Buffered(buffer_count=1) if single_buffer else None
        w1_mode = const_mode if nk == 1 else None
        return pl.pallas_call(
            kernel,
            out_shape=jax.ShapeDtypeStruct((B, 1), out_dtype),
            grid_spec=pltpu.PrefetchScalarGridSpec(
                num_scalar_prefetch=0,
                grid=(nb, nk),
                in_specs=[
                    _spec((bt, tk), lambda i, k: (i, k), None),        # x, streamed
                    _spec((tk, H1), lambda i, k: (k, 0), w1_mode),      # w1
                    _spec((1, H1), lambda i, k: (0, 0), const_mode),    # b1
                    _spec((H1, H2), lambda i, k: (0, 0), const_mode),   # w2
                    _spec((1, H2), lambda i, k: (0, 0), const_mode),    # b2
                    _spec((1, H2), lambda i, k: (0, 0), const_mode),    # w3 (row)
                    _spec((1, _O), lambda i, k: (0, 0), const_mode),    # b3
                ],
                out_specs=pl.BlockSpec((bt, 1), lambda i, k: (i, 0)),
                scratch_shapes=[pltpu.VMEM((bt, H1), jnp.float32)],
            ),
            compiler_params=pltpu.CompilerParams(
                dimension_semantics=("parallel", "arbitrary"),
                vmem_limit_bytes=vmem_limit,
            ),
            cost_estimate=cost,
        )

    args = (x, w1, b1, w2, b2, w3_row, b3)
    if single_buffer_weights:
        try:
            return _build(True)(*args)
        except Exception:
            pass  # fall back to default double-buffered constant blocks
    return _build(False)(*args)


# --------------------------------------------------------------------------- #
# Init / reference
# --------------------------------------------------------------------------- #
def init_params(key, num_ftrs):
    """Deterministic init mimicking nn.Linear's U(-1/sqrt(fan_in), 1/sqrt(fan_in))."""
    ks = jax.random.split(key, 6)

    def linear(kw, kb, fan_in, fan_out):
        bound = 1.0 / jnp.sqrt(jnp.float32(fan_in))
        w = jax.random.uniform(kw, (fan_in, fan_out), jnp.float32, -bound, bound)
        b = jax.random.uniform(kb, (1, fan_out), jnp.float32, -bound, bound)
        return w, b

    w1, b1 = linear(ks[0], ks[1], num_ftrs, _H1)
    w2, b2 = linear(ks[2], ks[3], _H1, _H2)
    w3, b3 = linear(ks[4], ks[5], _H2, _O)
    return {"w1": w1, "b1": b1, "w2": w2, "b2": b2, "w3": w3, "b3": b3}


def reference_forward(x, p):
    mm = lambda a, b: jnp.dot(a, b, precision=lax.Precision.HIGHEST)
    h1 = jnp.maximum(mm(x, p["w1"]) + p["b1"], 0.0)
    h2 = jnp.maximum(mm(h1, p["w2"]) + p["b2"], 0.0)
    return mm(h2, p["w3"]) + p["b3"]


if __name__ == "__main__":
    key = jax.random.PRNGKey(0)
    k_x, k_p, k_x2, k_x3 = jax.random.split(key, 4)

    B, num_ftrs = 8, 32
    x = jax.random.normal(k_x, (B, num_ftrs), jnp.float32)
    params = init_params(k_p, num_ftrs)

    # Exact f32 path (matches the PyTorch module's forward semantics).
    out = jax.block_until_ready(discriminator_forward(x, params, compute_dtype=None))
    ref = reference_forward(x, params)
    assert out.shape == (B, 1), out.shape
    assert jnp.allclose(out, ref, atol=1e-4, rtol=1e-4), "f32 mismatch vs reference"

    # Ragged batch: cdiv grid + partial final block, no wrapper-side jnp.pad.
    B2 = 300
    x2 = jax.random.normal(k_x2, (B2, num_ftrs), jnp.float32)
    out2 = jax.block_until_ready(discriminator_forward(x2, params, compute_dtype=None))
    ref2 = reference_forward(x2, params)
    assert out2.shape == (B2, 1), out2.shape
    assert jnp.allclose(out2, ref2, atol=1e-4, rtol=1e-4), "ragged mismatch vs reference"

    # K-tiled path (feature axis split; ragged last K block -> masked accumulate).
    B3, F3 = 64, 320
    x3 = jax.random.normal(k_x3, (B3, F3), jnp.float32)
    params3 = init_params(k_p, F3)
    out3 = jax.block_until_ready(
        discriminator_forward(x3, params3, compute_dtype=None, feature_tile=128))
    ref3 = reference_forward(x3, params3)
    assert out3.shape == (B3, 1), out3.shape
    assert jnp.allclose(out3, ref3, atol=1e-4, rtol=1e-4), "K-tiled mismatch vs reference"

    # Default bf16-compute path (halves the HBM x stream; f32 accumulation).
    out_bf = jax.block_until_ready(discriminator_forward(x2, params))
    assert out_bf.shape == (B2, 1), out_bf.shape
    assert jnp.allclose(out_bf, ref2, atol=5e-2, rtol=5e-2), "bf16 mismatch vs reference"

    print("KERNEL_OK")
</pallas_src>

<mosaic_0001>
module attributes {stable_mosaic.version = 11 : i64} {
  func.func @_disc_kernel(%arg0: i32, %arg1: i32, %arg2: memref<8x32xf32, #tpu.memory_space<vmem>>, %arg3: memref<32x50xf32, #tpu.memory_space<vmem>>, %arg4: memref<1x50xf32, #tpu.memory_space<vmem>>, %arg5: memref<50x20xf32, #tpu.memory_space<vmem>>, %arg6: memref<1x20xf32, #tpu.memory_space<vmem>>, %arg7: memref<1x20xf32, #tpu.memory_space<vmem>>, %arg8: memref<1x1xf32, #tpu.memory_space<vmem>>, %arg9: memref<8x1xf32, #tpu.memory_space<vmem>>, %arg10: memref<8x50xf32, #tpu.memory_space<vmem>>) attributes {dimension_semantics = [#tpu.dimension_semantics<parallel>, #tpu.dimension_semantics<arbitrary>], iteration_bounds = array<i64: 1, 1>, scalar_prefetch = 0 : i64, scratch_operands = 1 : i64, tpu.core_type = #tpu.core_type<tc>, window_params = [{transform_indices = @transform_0, window_bounds = array<i64: 8, 32>}, {pipeline_mode = #tpu.pipeline_mode<synchronous>, transform_indices = @transform_1, window_bounds = array<i64: 32, 50>}, {pipeline_mode = #tpu.pipeline_mode<synchronous>, transform_indices = @transform_2, window_bounds = array<i64: 1, 50>}, {pipeline_mode = #tpu.pipeline_mode<synchronous>, transform_indices = @transform_3, window_bounds = array<i64: 50, 20>}, {pipeline_mode = #tpu.pipeline_mode<synchronous>, transform_indices = @transform_4, window_bounds = array<i64: 1, 20>}, {pipeline_mode = #tpu.pipeline_mode<synchronous>, transform_indices = @transform_5, window_bounds = array<i64: 1, 20>}, {pipeline_mode = #tpu.pipeline_mode<synchronous>, transform_indices = @transform_6, window_bounds = array<i64: 1, 1>}, {transform_indices = @transform_7, window_bounds = array<i64: 8, 1>}]} {
    %c0_i32 = arith.constant 0 : i32
    %0 = arith.cmpi eq, %arg1, %c0_i32 : i32
    %1 = arith.extui %0 : i1 to i32
    %c0_i32_0 = arith.constant 0 : i32
    %2 = arith.cmpi ne, %1, %c0_i32_0 : i32
    scf.if %2 {
      %cst_10 = arith.constant 0.000000e+00 : f32
      %12 = vector.broadcast %cst_10 : f32 to vector<8x50xf32>
      %c0_11 = arith.constant 0 : index
      %c0_12 = arith.constant 0 : index
      %13 = vector.load %arg10[%c0_11, %c0_12] : memref<8x50xf32, #tpu.memory_space<vmem>>, vector<8x50xf32>
      tpu.vector_store %arg10[%c0_11, %c0_12], %12 {strides = array<i32>} : memref<8x50xf32, #tpu.memory_space<vmem>>, vector<8x50xf32>,
    } else {
    }
    %c0 = arith.constant 0 : index
    %c0_1 = arith.constant 0 : index
    %3 = vector.load %arg2[%c0, %c0_1] : memref<8x32xf32, #tpu.memory_space<vmem>>, vector<8x32xf32>
    %c0_2 = arith.constant 0 : index
    %c0_3 = arith.constant 0 : index
    %4 = vector.load %arg3[%c0_2, %c0_3] : memref<32x50xf32, #tpu.memory_space<vmem>>, vector<32x50xf32>
    %c0_4 = arith.constant 0 : index
    %c0_5 = arith.constant 0 : index
    %5 = vector.load %arg10[%c0_4, %c0_5] : memref<8x50xf32, #tpu.memory_space<vmem>>, vector<8x50xf32>
    %cst = arith.constant dense<0.000000e+00> : vector<8x50xf32>
    %6 = tpu.matmul %3, %4, %cst {dimension_numbers = #tpu.dot_dimension_numbers<[1], [0], [0], [1], [0, 0, 1, 1], [], []>} : vector<8x32xf32>, vector<32x50xf32>, vector<8x50xf32> -> vector<8x50xf32>
    %7 = arith.addf %5, %6 : vector<8x50xf32>
    %c0_6 = arith.constant 0 : index
    %c0_7 = arith.constant 0 : index
    %8 = vector.load %arg10[%c0_6, %c0_7] : memref<8x50xf32, #tpu.memory_space<vmem>>, vector<8x50xf32>
    tpu.vector_store %arg10[%c0_6, %c0_7], %7 {strides = array<i32>} : memref<8x50xf32, #tpu.memory_space<vmem>>, vector<8x50xf32>,
    %c0_i32_8 = arith.constant 0 : i32
    %9 = arith.cmpi eq, %arg1, %c0_i32_8 : i32
    %10 = arith.extui %9 : i1 to i32
    %c0_i32_9 = arith.constant 0 : i32
    %11 = arith.cmpi ne, %10, %c0_i32_9 : i32
    scf.if %11 {
      %c0_10 = arith.constant 0 : index
      %c0_11 = arith.constant 0 : index
      %12 = vector.load %arg10[%c0_10, %c0_11] : memref<8x50xf32, #tpu.memory_space<vmem>>, vector<8x50xf32>
      %c0_12 = arith.constant 0 : index
      %c0_13 = arith.constant 0 : index
      %13 = vector.load %arg4[%c0_12, %c0_13] : memref<1x50xf32, #tpu.memory_space<vmem>>, vector<1x50xf32>
      %14 = vector.broadcast %13 : vector<1x50xf32> to vector<8x50xf32>
      %15 = arith.addf %12, %14 : vector<8x50xf32>
      %cst_14 = arith.constant 0.000000e+00 : f32
      %16 = vector.broadcast %cst_14 : f32 to vector<8x50xf32>
      %17 = arith.maximumf %15, %16 : vector<8x50xf32>
      %c0_15 = arith.constant 0 : index
      %c0_16 = arith.constant 0 : index
      %18 = vector.load %arg5[%c0_15, %c0_16] : memref<50x20xf32, #tpu.memory_space<vmem>>, vector<50x20xf32>
      %cst_17 = arith.constant dense<0.000000e+00> : vector<8x20xf32>
      %19 = tpu.matmul %17, %18, %cst_17 {dimension_numbers = #tpu.dot_dimension_numbers<[1], [0], [0], [1], [0, 0, 1, 1], [], []>} : vector<8x50xf32>, vector<50x20xf32>, vector<8x20xf32> -> vector<8x20xf32>
      %c0_18 = arith.constant 0 : index
      %c0_19 = arith.constant 0 : index
      %20 = vector.load %arg6[%c0_18, %c0_19] : memref<1x20xf32, #tpu.memory_space<vmem>>, vector<1x20xf32>
      %21 = vector.broadcast %20 : vector<1x20xf32> to vector<8x20xf32>
      %22 = arith.addf %19, %21 : vector<8x20xf32>
      %cst_20 = arith.constant 0.000000e+00 : f32
      %23 = vector.broadcast %cst_20 : f32 to vector<8x20xf32>
      %24 = arith.maximumf %22, %23 : vector<8x20xf32>
      %c0_21 = arith.constant 0 : index
      %c0_22 = arith.constant 0 : index
      %25 = vector.load %arg7[%c0_21, %c0_22] : memref<1x20xf32, #tpu.memory_space<vmem>>, vector<1x20xf32>
      %26 = vector.broadcast %25 : vector<1x20xf32> to vector<8x20xf32>
      %27 = arith.mulf %24, %26 : vector<8x20xf32>
      %cst_23 = arith.constant dense<0.000000e+00> : vector<8xf32>
      %28 = vector.multi_reduction <add>, %27, %cst_23 [1] : vector<8x20xf32> to vector<8xf32>
      %29 = vector.shape_cast %28 : vector<8xf32> to vector<8x1xf32>
      %c0_24 = arith.constant 0 : index
      %c0_25 = arith.constant 0 : index
      %30 = vector.load %arg8[%c0_24, %c0_25] : memref<1x1xf32, #tpu.memory_space<vmem>>, vector<1x1xf32>
      %31 = vector.broadcast %30 : vector<1x1xf32> to vector<8x1xf32>
      %32 = arith.addf %29, %31 : vector<8x1xf32>
      %c0_26 = arith.constant 0 : index
      %c0_27 = arith.constant 0 : index
      %33 = vector.load %arg9[%c0_26, %c0_27] : memref<8x1xf32, #tpu.memory_space<vmem>>, vector<8x1xf32>
      tpu.vector_store %arg9[%c0_26, %c0_27], %32 {strides = array<i32>} : memref<8x1xf32, #tpu.memory_space<vmem>>, vector<8x1xf32>,
    } else {
    }
    return
  }
  func.func @transform_0(%arg0: i32, %arg1: i32) -> (i32, i32) {
    %c0_i32 = arith.constant 0 : i32
    return %arg0, %arg1 : i32, i32
  }
  func.func @transform_1(%arg0: i32, %arg1: i32) -> (i32, i32) {
    %c0_i32 = arith.constant 0 : i32
    %c0_i32_0 = arith.constant 0 : i32
    return %arg1, %c0_i32 : i32, i32
  }
  func.func @transform_2(%arg0: i32, %arg1: i32) -> (i32, i32) {
    %c0_i32 = arith.constant 0 : i32
    %c0_i32_0 = arith.constant 0 : i32
    %c0_i32_1 = arith.constant 0 : i32
    return %c0_i32, %c0_i32_0 : i32, i32
  }
  func.func @transform_3(%arg0: i32, %arg1: i32) -> (i32, i32) {
    %c0_i32 = arith.constant 0 : i32
    %c0_i32_0 = arith.constant 0 : i32
    %c0_i32_1 = arith.constant 0 : i32
    return %c0_i32, %c0_i32_0 : i32, i32
  }
  func.func @transform_4(%arg0: i32, %arg1: i32) -> (i32, i32) {
    %c0_i32 = arith.constant 0 : i32
    %c0_i32_0 = arith.constant 0 : i32
    %c0_i32_1 = arith.constant 0 : i32
    return %c0_i32, %c0_i32_0 : i32, i32
  }
  func.func @transform_5(%arg0: i32, %arg1: i32) -> (i32, i32) {
    %c0_i32 = arith.constant 0 : i32
    %c0_i32_0 = arith.constant 0 : i32
    %c0_i32_1 = arith.constant 0 : i32
    return %c0_i32, %c0_i32_0 : i32, i32
  }
  func.func @transform_6(%arg0: i32, %arg1: i32) -> (i32, i32) {
    %c0_i32 = arith.constant 0 : i32
    %c0_i32_0 = arith.constant 0 : i32
    %c0_i32_1 = arith.constant 0 : i32
    return %c0_i32, %c0_i32_0 : i32, i32
  }
  func.func @transform_7(%arg0: i32, %arg1: i32) -> (i32, i32) {
    %c0_i32 = arith.constant 0 : i32
    %c0_i32_0 = arith.constant 0 : i32
    return %arg0, %c0_i32 : i32, i32
  }
}

module attributes {stable_mosaic.version = 11 : i64} {
  func.func @_disc_kernel(%arg0: i32, %arg1: i32, %arg2: memref<8x32xf32, #tpu.memory_space<vmem>>, %arg3: memref<32x50xf32, #tpu.memory_space<vmem>>, %arg4: memref<1x50xf32, #tpu.memory_space<vmem>>, %arg5: memref<50x20xf32, #tpu.memory_space<vmem>>, %arg6: memref<1x20xf32, #tpu.memory_space<vmem>>, %arg7: memref<1x20xf32, #tpu.memory_space<vmem>>, %arg8: memref<1x1xf32, #tpu.memory_space<vmem>>, %arg9: memref<8x1xf32, #tpu.memory_space<vmem>>, %arg10: memref<8x50xf32, #tpu.memory_space<vmem>>) attributes {dimension_semantics = [#tpu.dimension_semantics<parallel>, #tpu.dimension_semantics<arbitrary>], iteration_bounds = array<i64: 1, 1>, scalar_prefetch = 0 : i64, scratch_operands = 1 : i64, tpu.core_type = #tpu.core_type<tc>, window_params = [{transform_indices = @transform_0, window_bounds = array<i64: 8, 32>}, {transform_indices = @transform_1, window_bounds = array<i64: 32, 50>}, {pipeline_mode = #tpu.pipeline_mode<synchronous>, transform_indices = @transform_2, window_bounds = array<i64: 1, 50>}, {pipeline_mode = #tpu.pipeline_mode<synchronous>, transform_indices = @transform_3, window_bounds = array<i64: 50, 20>}, {pipeline_mode = #tpu.pipeline_mode<synchronous>, transform_indices = @transform_4, window_bounds = array<i64: 1, 20>}, {pipeline_mode = #tpu.pipeline_mode<synchronous>, transform_indices = @transform_5, window_bounds = array<i64: 1, 20>}, {pipeline_mode = #tpu.pipeline_mode<synchronous>, transform_indices = @transform_6, window_bounds = array<i64: 1, 1>}, {transform_indices = @transform_7, window_bounds = array<i64: 8, 1>}]} {
    %c0_i32 = arith.constant 0 : i32
    %0 = arith.cmpi eq, %arg1, %c0_i32 : i32
    %1 = arith.extui %0 : i1 to i32
    %c0_i32_0 = arith.constant 0 : i32
    %2 = arith.cmpi ne, %1, %c0_i32_0 : i32
    scf.if %2 {
      %cst_10 = arith.constant 0.000000e+00 : f32
      %12 = vector.broadcast %cst_10 : f32 to vector<8x50xf32>
      %c0_11 = arith.constant 0 : index
      %c0_12 = arith.constant 0 : index
      %13 = vector.load %arg10[%c0_11, %c0_12] : memref<8x50xf32, #tpu.memory_space<vmem>>, vector<8x50xf32>
      tpu.vector_store %arg10[%c0_11, %c0_12], %12 {strides = array<i32>} : memref<8x50xf32, #tpu.memory_space<vmem>>, vector<8x50xf32>,
    } else {
    }
    %c0 = arith.constant 0 : index
    %c0_1 = arith.constant 0 : index
    %3 = vector.load %arg2[%c0, %c0_1] : memref<8x32xf32, #tpu.memory_space<vmem>>, vector<8x32xf32>
    %c0_2 = arith.constant 0 : index
    %c0_3 = arith.constant 0 : index
    %4 = vector.load %arg3[%c0_2, %c0_3] : memref<32x50xf32, #tpu.memory_space<vmem>>, vector<32x50xf32>
    %c0_4 = arith.constant 0 : index
    %c0_5 = arith.constant 0 : index
    %5 = vector.load %arg10[%c0_4, %c0_5] : memref<8x50xf32, #tpu.memory_space<vmem>>, vector<8x50xf32>
    %cst = arith.constant dense<0.000000e+00> : vector<8x50xf32>
    %6 = tpu.matmul %3, %4, %cst {dimension_numbers = #tpu.dot_dimension_numbers<[1], [0], [0], [1], [0, 0, 1, 1], [], []>} : vector<8x32xf32>, vector<32x50xf32>, vector<8x50xf32> -> vector<8x50xf32>
    %7 = arith.addf %5, %6 : vector<8x50xf32>
    %c0_6 = arith.constant 0 : index
    %c0_7 = arith.constant 0 : index
    %8 = vector.load %arg10[%c0_6, %c0_7] : memref<8x50xf32, #tpu.memory_space<vmem>>, vector<8x50xf32>
    tpu.vector_store %arg10[%c0_6, %c0_7], %7 {strides = array<i32>} : memref<8x50xf32, #tpu.memory_space<vmem>>, vector<8x50xf32>,
    %c0_i32_8 = arith.constant 0 : i32
    %9 = arith.cmpi eq, %arg1, %c0_i32_8 : i32
    %10 = arith.extui %9 : i1 to i32
    %c0_i32_9 = arith.constant 0 : i32
    %11 = arith.cmpi ne, %10, %c0_i32_9 : i32
    scf.if %11 {
      %c0_10 = arith.constant 0 : index
      %c0_11 = arith.constant 0 : index
      %12 = vector.load %arg10[%c0_10, %c0_11] : memref<8x50xf32, #tpu.memory_space<vmem>>, vector<8x50xf32>
      %c0_12 = arith.constant 0 : index
      %c0_13 = arith.constant 0 : index
      %13 = vector.load %arg4[%c0_12, %c0_13] : memref<1x50xf32, #tpu.memory_space<vmem>>, vector<1x50xf32>
      %14 = vector.broadcast %13 : vector<1x50xf32> to vector<8x50xf32>
      %15 = arith.addf %12, %14 : vector<8x50xf32>
      %cst_14 = arith.constant 0.000000e+00 : f32
      %16 = vector.broadcast %cst_14 : f32 to vector<8x50xf32>
      %17 = arith.maximumf %15, %16 : vector<8x50xf32>
      %c0_15 = arith.constant 0 : index
      %c0_16 = arith.constant 0 : index
      %18 = vector.load %arg5[%c0_15, %c0_16] : memref<50x20xf32, #tpu.memory_space<vmem>>, vector<50x20xf32>
      %cst_17 = arith.constant dense<0.000000e+00> : vector<8x20xf32>
      %19 = tpu.matmul %17, %18, %cst_17 {dimension_numbers = #tpu.dot_dimension_numbers<[1], [0], [0], [1], [0, 0, 1, 1], [], []>} : vector<8x50xf32>, vector<50x20xf32>, vector<8x20xf32> -> vector<8x20xf32>
      %c0_18 = arith.constant 0 : index
      %c0_19 = arith.constant 0 : index
      %20 = vector.load %arg6[%c0_18, %c0_19] : memref<1x20xf32, #tpu.memory_space<vmem>>, vector<1x20xf32>
      %21 = vector.broadcast %20 : vector<1x20xf32> to vector<8x20xf32>
      %22 = arith.addf %19, %21 : vector<8x20xf32>
      %cst_20 = arith.constant 0.000000e+00 : f32
      %23 = vector.broadcast %cst_20 : f32 to vector<8x20xf32>
      %24 = arith.maximumf %22, %23 : vector<8x20xf32>
      %c0_21 = arith.constant 0 : index
      %c0_22 = arith.constant 0 : index
      %25 = vector.load %arg7[%c0_21, %c0_22] : memref<1x20xf32, #tpu.memory_space<vmem>>, vector<1x20xf32>
      %26 = vector.broadcast %25 : vector<1x20xf32> to vector<8x20xf32>
      %27 = arith.mulf %24, %26 : vector<8x20xf32>
      %cst_23 = arith.constant dense<0.000000e+00> : vector<8xf32>
      %28 = vector.multi_reduction <add>, %27, %cst_23 [1] : vector<8x20xf32> to vector<8xf32>
      %29 = vector.shape_cast %28 : vector<8xf32> to vector<8x1xf32>
      %c0_24 = arith.constant 0 : index
      %c0_25 = arith.constant 0 : index
      %30 = vector.load %arg8[%c0_24, %c0_25] : memref<1x1xf32, #tpu.memory_space<vmem>>, vector<1x1xf32>
      %31 = vector.broadcast %30 : vector<1x1xf32> to vector<8x1xf32>
      %32 = arith.addf %29, %31 : vector<8x1xf32>
      %c0_26 = arith.constant 0 : index
      %c0_27 = arith.constant 0 : index
      %33 = vector.load %arg9[%c0_26, %c0_27] : memref<8x1xf32, #tpu.memory_space<vmem>>, vector<8x1xf32>
      tpu.vector_store %arg9[%c0_26, %c0_27], %32 {strides = array<i32>} : memref<8x1xf32, #tpu.memory_space<vmem>>, vector<8x1xf32>,
    } else {
    }
    return
  }
  func.func @transform_0(%arg0: i32, %arg1: i32) -> (i32, i32) {
    %c0_i32 = arith.constant 0 : i32
    return %arg0, %arg1 : i32, i32
  }
  func.func @transform_1(%arg0: i32, %arg1: i32) -> (i32, i32) {
    %c0_i32 = arith.constant 0 : i32
    %c0_i32_0 = arith.constant 0 : i32
    return %arg1, %c0_i32 : i32, i32
  }
  func.func @transform_2(%arg0: i32, %arg1: i32) -> (i32, i32) {
    %c0_i32 = arith.constant 0 : i32
    %c0_i32_0 = arith.constant 0 : i32
    %c0_i32_1 = arith.constant 0 : i32
    return %c0_i32, %c0_i32_0 : i32, i32
  }
  func.func @transform_3(%arg0: i32, %arg1: i32) -> (i32, i32) {
    %c0_i32 = arith.constant 0 : i32
    %c0_i32_0 = arith.constant 0 : i32
    %c0_i32_1 = arith.constant 0 : i32
    return %c0_i32, %c0_i32_0 : i32, i32
  }
  func.func @transform_4(%arg0: i32, %arg1: i32) -> (i32, i32) {
    %c0_i32 = arith.constant 0 : i32
    %c0_i32_0 = arith.constant 0 : i32
    %c0_i32_1 = arith.constant 0 : i32
    return %c0_i32, %c0_i32_0 : i32, i32
  }
  func.func @transform_5(%arg0: i32, %arg1: i32) -> (i32, i32) {
    %c0_i32 = arith.constant 0 : i32
    %c0_i32_0 = arith.constant 0 : i32
    %c0_i32_1 = arith.constant 0 : i32
    return %c0_i32, %c0_i32_0 : i32, i32
  }
  func.func @transform_6(%arg0: i32, %arg1: i32) -> (i32, i32) {
    %c0_i32 = arith.constant 0 : i32
    %c0_i32_0 = arith.constant 0 : i32
    %c0_i32_1 = arith.constant 0 : i32
    return %c0_i32, %c0_i32_0 : i32, i32
  }
  func.func @transform_7(%arg0: i32, %arg1: i32) -> (i32, i32) {
    %c0_i32 = arith.constant 0 : i32
    %c0_i32_0 = arith.constant 0 : i32
    return %arg0, %c0_i32 : i32, i32
  }
}

</mosaic_0001>

<bundles_post_ra>
// kernel: tpu_custom_call.1
= control target key start
LH: loop header
LB: loop body
LE: loop exit
PB: predicated region body
PF: predicated region fallthrough
CT: control target
= control target key end

     0   :  { %vm32_vm0 = vcmask 408576   ;;  %v144_v2 = vmov 0.0   ;;  %vm40_vm1 = vcmask 261120   ;;  %vm91_vm2 = vcmask 1041408   ;;  %s239_s1 = inlined_call_operand.vmem [shape: f32[32,50], index: 1, kind: input, shape index: {}]   ;;  %s240_s0 = inlined_call_operand.vmem [shape: f32[8,32], index: 0, kind: input, shape index: {}]   ;;  %s241_s2 = inlined_call_operand.vmem [shape: f32[1,50], index: 2, kind: input, shape index: {}]   ;;  %s242_s4 = inlined_call_operand.vmem [shape: f32[1,20], index: 4, kind: input, shape index: {}]   ;;  %s243_s3 = inlined_call_operand.vmem [shape: f32[50,20], index: 3, kind: input, shape index: {}]   ;;  %s244_s5 = inlined_call_operand.vmem [shape: f32[1,20], index: 5, kind: input, shape index: {}]   ;;  %s245_s6 = inlined_call_operand.<no memory space> [shape: f32[1,1], index: 6, kind: input, shape index: {}]   ;;  %s246_s7 = inlined_call_operand.vmem [shape: f32[8,1], index: 7, kind: output, shape index: {}]  }
   0x1   :  { %v38_v0 = vld [vmem:[%s239_s1 + $0x18] sm:$0xff]  ;;  %v37_v1 = vld [vmem:[%s239_s1 + $0x10] sm:$0xff]  ;;  %33 = vst.msk [vmem:[#allocation2] sm:$0xff] %vm32_vm0, %v144_v2  ;;  %v36_v3 = vld [vmem:[%s239_s1 + $0x8] sm:$0xff]  ;;  %v12_v20 = vstv %s245_s6  ;;  %vm121_vm3 = vcmask 162816   ;;  %vm130_vm4 = vcmask 7168  }
   0x2   :  { %56 = vmatpush.msra.mxu0 %v38_v0  ;;  %v35_v4 = vld [vmem:[%s239_s1] sm:$0xff]  ;;  %v83_v6 = vld [vmem:[%s243_s3 + $0x30] sm:$0x3]  ;;  %v82_v7 = vld [vmem:[%s243_s3 + $0x28] sm:$0xff]  ;;  %13 = vst [vmem:[#allocation3] sm:$0x1] %v12_v20 }
   0x3   :  { %v34_v5 = vld [vmem:[%s240_s0] sm:$0xff]  ;;  %137 = vmatpush.msk.msra.mxu1 %vm91_vm2, %v83_v6  ;;  %v80_v9 = vld [vmem:[%s243_s3 + $0x18] sm:$0xff]  ;;  %v79_v10 = vld [vmem:[%s243_s3 + $0x10] sm:$0xff] }
   0x4   :  { %57 = vmatpush.msra.mxu0 %v37_v1  ;;  %v81_v8 = vld [vmem:[%s243_s3 + $0x20] sm:$0xff]  ;;  %v78_v11 = vld [vmem:[%s243_s3 + $0x8] sm:$0xff] }
   0x5   :  { %105 = vmatpush.msra.mxu1 %v82_v7  ;;  %v77_v12 = vld [vmem:[%s243_s3] sm:$0xff] }
   0x6   :  { %58 = vmatpush.msra.mxu0 %v36_v3  ;;  %v140_v16 = vld [vmem:[%s241_s2] ss:$0 sm:$0xff] }
   0x7   :  { %106 = vmatpush.msra.mxu1 %v81_v8  ;;  %v141_v21 = vld [vmem:[%s242_s4] ss:$0 sm:$0xff] }
   0x8   :  { %59 = vmatpush.msra.mxu0 %v35_v4  ;;  %v39_v13 = vld [vmem:[#allocation2] sm:$0xff] }
   0x9   :  { %136 = vmatmul.msk.f32.vlgmr.msra.gmra.mxu0 %vm40_vm1, %v34_v5  ;;  %107 = vmatpush.msra.mxu1 %v80_v9  ;;  %v142_v24 = vld [vmem:[%s244_s5] ss:$0 sm:$0xff]  ;;  %v143_v28 = vld [vmem:[#allocation3] ss:$0 sm:$0xff] }
   0xb   :  { %108 = vmatpush.msra.mxu1 %v79_v10 }
   0xd   :  { %109 = vmatpush.msra.mxu1 %v78_v11 }
   0xf   :  { %110 = vmatpush.msra.mxu1 %v77_v12 }
  0x86   :  { %v61_v14 = vpop.f32.mrf.mxu0 }
  0x87   :  { %v64_v15 = vadd.f32 %v61_v14, %v39_v13 }
  0x89   :  { %66 = vst.msk [vmem:[#allocation2] sm:$0xff] %vm32_vm0, %v64_v15 }
  0x90   :  { %v70_v17 = vld [vmem:[#allocation2] sm:$0xff] }
  0x91   :  { %v75_v18 = vadd.f32 %v140_v16, %v70_v17 }
  0x93   :  { %v76_v19 = vmax.f32 %v75_v18, 0.0 }
  0x95   :  { %138 = vmatmul.msk.f32.vlgmr.msra.gmra.mxu1 %vm32_vm0, %v76_v19 }
 0x112   :  { %v112_v22 = vpop.f32.mrf.mxu1 }
 0x113   :  { %v113_v23 = vadd.f32 %v141_v21, %v112_v22 }
 0x115   :  { %v115_v25 = vmax.f32 %v113_v23, 0.0 }
 0x117   :  { %v120_v26 = vmul.f32 %v142_v24, %v115_v25 }
 0x119   :  { %v122_v27 = vsel %vm121_vm3, %v120_v26, 0.0 }
 0x11a   :  { %123 = vadd.xlane.f32.xlu0 %v122_v27 }
 0x18d   :  { %v124_v29 = vpop.xlane.xlu0 %123 }
 0x18e   :  { %v129_v30 = vadd.f32 %v143_v28, %v124_v29 }
 0x190   :  { %131 = vst.msk [vmem:[%s246_s7] sm:$0xff] %vm130_vm4, %v129_v30 }

// kernel: tpu_custom_call.1
= control target key start
LH: loop header
LB: loop body
LE: loop exit
PB: predicated region body
PF: predicated region fallthrough
CT: control target
= control target key end

     0   :  { %vm32_vm0 = vcmask 408576   ;;  %v144_v2 = vmov 0.0   ;;  %vm40_vm1 = vcmask 261120   ;;  %vm91_vm2 = vcmask 1041408   ;;  %s239_s1 = inlined_call_operand.vmem [shape: f32[32,50], index: 1, kind: input, shape index: {}]   ;;  %s240_s0 = inlined_call_operand.vmem [shape: f32[8,32], index: 0, kind: input, shape index: {}]   ;;  %s241_s2 = inlined_call_operand.vmem [shape: f32[1,50], index: 2, kind: input, shape index: {}]   ;;  %s242_s4 = inlined_call_operand.vmem [shape: f32[1,20], index: 4, kind: input, shape index: {}]   ;;  %s243_s3 = inlined_call_operand.vmem [shape: f32[50,20], index: 3, kind: input, shape index: {}]   ;;  %s244_s5 = inlined_call_operand.vmem [shape: f32[1,20], index: 5, kind: input, shape index: {}]   ;;  %s245_s6 = inlined_call_operand.<no memory space> [shape: f32[1,1], index: 6, kind: input, shape index: {}]   ;;  %s246_s7 = inlined_call_operand.vmem [shape: f32[8,1], index: 7, kind: output, shape index: {}]  }
   0x1   :  { %v38_v0 = vld [vmem:[%s239_s1 + $0x18] sm:$0xff]  ;;  %v37_v1 = vld [vmem:[%s239_s1 + $0x10] sm:$0xff]  ;;  %33 = vst.msk [vmem:[#allocation2] sm:$0xff] %vm32_vm0, %v144_v2  ;;  %v36_v3 = vld [vmem:[%s239_s1 + $0x8] sm:$0xff]  ;;  %v12_v20 = vstv %s245_s6  ;;  %vm121_vm3 = vcmask 162816   ;;  %vm130_vm4 = vcmask 7168  }
   0x2   :  { %56 = vmatpush.msra.mxu0 %v38_v0  ;;  %v35_v4 = vld [vmem:[%s239_s1] sm:$0xff]  ;;  %v83_v6 = vld [vmem:[%s243_s3 + $0x30] sm:$0x3]  ;;  %v82_v7 = vld [vmem:[%s243_s3 + $0x28] sm:$0xff]  ;;  %13 = vst [vmem:[#allocation3] sm:$0x1] %v12_v20 }
   0x3   :  { %v34_v5 = vld [vmem:[%s240_s0] sm:$0xff]  ;;  %137 = vmatpush.msk.msra.mxu1 %vm91_vm2, %v83_v6  ;;  %v80_v9 = vld [vmem:[%s243_s3 + $0x18] sm:$0xff]  ;;  %v79_v10 = vld [vmem:[%s243_s3 + $0x10] sm:$0xff] }
   0x4   :  { %57 = vmatpush.msra.mxu0 %v37_v1  ;;  %v81_v8 = vld [vmem:[%s243_s3 + $0x20] sm:$0xff]  ;;  %v78_v11 = vld [vmem:[%s243_s3 + $0x8] sm:$0xff] }
   0x5   :  { %105 = vmatpush.msra.mxu1 %v82_v7  ;;  %v77_v12 = vld [vmem:[%s243_s3] sm:$0xff] }
   0x6   :  { %58 = vmatpush.msra.mxu0 %v36_v3  ;;  %v140_v16 = vld [vmem:[%s241_s2] ss:$0 sm:$0xff] }
   0x7   :  { %106 = vmatpush.msra.mxu1 %v81_v8  ;;  %v141_v21 = vld [vmem:[%s242_s4] ss:$0 sm:$0xff] }
   0x8   :  { %59 = vmatpush.msra.mxu0 %v35_v4  ;;  %v39_v13 = vld [vmem:[#allocation2] sm:$0xff] }
   0x9   :  { %136 = vmatmul.msk.f32.vlgmr.msra.gmra.mxu0 %vm40_vm1, %v34_v5  ;;  %107 = vmatpush.msra.mxu1 %v80_v9  ;;  %v142_v24 = vld [vmem:[%s244_s5] ss:$0 sm:$0xff]  ;;  %v143_v28 = vld [vmem:[#allocation3] ss:$0 sm:$0xff] }
   0xb   :  { %108 = vmatpush.msra.mxu1 %v79_v10 }
   0xd   :  { %109 = vmatpush.msra.mxu1 %v78_v11 }
   0xf   :  { %110 = vmatpush.msra.mxu1 %v77_v12 }
  0x86   :  { %v61_v14 = vpop.f32.mrf.mxu0 }
  0x87   :  { %v64_v15 = vadd.f32 %v61_v14, %v39_v13 }
  0x89   :  { %66 = vst.msk [vmem:[#allocation2] sm:$0xff] %vm32_vm0, %v64_v15 }
  0x90   :  { %v70_v17 = vld [vmem:[#allocation2] sm:$0xff] }
  0x91   :  { %v75_v18 = vadd.f32 %v140_v16, %v70_v17 }
  0x93   :  { %v76_v19 = vmax.f32 %v75_v18, 0.0 }
  0x95   :  { %138 = vmatmul.msk.f32.vlgmr.msra.gmra.mxu1 %vm32_vm0, %v76_v19 }
 0x112   :  { %v112_v22 = vpop.f32.mrf.mxu1 }
 0x113   :  { %v113_v23 = vadd.f32 %v141_v21, %v112_v22 }
 0x115   :  { %v115_v25 = vmax.f32 %v113_v23, 0.0 }
 0x117   :  { %v120_v26 = vmul.f32 %v142_v24, %v115_v25 }
 0x119   :  { %v122_v27 = vsel %vm121_vm3, %v120_v26, 0.0 }
 0x11a   :  { %123 = vadd.xlane.f32.xlu0 %v122_v27 }
 0x18d   :  { %v124_v29 = vpop.xlane.xlu0 %123 }
 0x18e   :  { %v129_v30 = vadd.f32 %v143_v28, %v124_v29 }
 0x190   :  { %131 = vst.msk [vmem:[%s246_s7] sm:$0xff] %vm130_vm4, %v129_v30 }

</bundles_post_ra>
